<compile_context>
chip_gen: v6e
topology: v6e:2x2x1
jax: 0.10.0
libtpu: 0.0.40
codegen_flags: <defaults>
</compile_context>

<pallas_src>
import functools
import math

import jax
import jax.numpy as jnp
from jax.experimental import pallas as pl
from jax.experimental.pallas import tpu as pltpu


def _self_attn_layer_kernel(x_ref, pos_ref,
                            wq_ref, wk_ref, wv_ref, wo_ref,
                            bq_ref, bk_ref, bv_ref, bo_ref,
                            gamma_ref, beta_ref,
                            o_ref, *, nhead, scale, eps):
    # x_ref/pos_ref/o_ref: (1, L, E); w*_ref: (E, E) bf16; b*/gamma/beta: (1, E) f32
    x = x_ref[0].astype(jnp.float32)          # (L, E)
    pos = pos_ref[0].astype(jnp.float32)

    qk_in = (x + pos).astype(jnp.bfloat16)    # q = k = tgt + query_pos
    x_bf = x.astype(jnp.bfloat16)             # value path uses tgt (no pos)

    # Q/K/V projections: bf16 operands, f32 accumulation, f32 bias add.
    q = jnp.dot(qk_in, wq_ref[...], preferred_element_type=jnp.float32) + bq_ref[...]
    k = jnp.dot(qk_in, wk_ref[...], preferred_element_type=jnp.float32) + bk_ref[...]
    v = jnp.dot(x_bf, wv_ref[...], preferred_element_type=jnp.float32) + bv_ref[...]

    L, E = x.shape
    D = E // nhead
    wo = wo_ref[...]                          # (E, E) bf16, resident in VMEM

    # Multi-head scaled-dot-product attention with the output projection folded
    # into the head loop (avoids an in-kernel concatenate).
    o = jnp.zeros((L, E), jnp.float32)
    for h in range(nhead):
        sl = slice(h * D, (h + 1) * D)
        qh = q[:, sl].astype(jnp.bfloat16)    # (L, D)
        kh = k[:, sl].astype(jnp.bfloat16)
        vh = v[:, sl].astype(jnp.bfloat16)

        # scores = qh @ kh^T * scale  (contract last dims -> no explicit transpose)
        s = jax.lax.dot_general(qh, kh, (((1,), (1,)), ((), ())),
                                preferred_element_type=jnp.float32) * scale
        s = s - jnp.max(s, axis=-1, keepdims=True)          # f32 softmax
        p = jnp.exp(s)
        p = p / jnp.sum(p, axis=-1, keepdims=True)

        oh = jnp.dot(p.astype(jnp.bfloat16), vh,
                     preferred_element_type=jnp.float32)     # (L, D)
        o = o + jnp.dot(oh.astype(jnp.bfloat16), wo[sl, :],
                        preferred_element_type=jnp.float32)  # (L, E)
    o = o + bo_ref[...]

    # Residual + LayerNorm (dropout p=0.0 -> identity), f32 epilogue.
    y = x + o
    mu = jnp.mean(y, axis=-1, keepdims=True)
    var = jnp.mean((y - mu) ** 2, axis=-1, keepdims=True)
    yn = (y - mu) * jax.lax.rsqrt(var + eps)
    o_ref[0] = (yn * gamma_ref[...] + beta_ref[...]).astype(o_ref.dtype)


@functools.partial(jax.jit, static_argnames=("nhead", "eps"))
def self_attention_layer_forward(tgt, query_pos, params, *, nhead, eps=1e-5):
    """Fused forward_post. tgt/query_pos: (L, B, E) like PyTorch (seq, batch, d_model)."""
    L, B, E = tgt.shape
    assert E % nhead == 0

    # Kernel processes one batch element per grid step -> (B, L, E) layout.
    x = jnp.transpose(tgt, (1, 0, 2))
    pos = jnp.transpose(query_pos, (1, 0, 2))

    wq = params["wq"].astype(jnp.bfloat16)
    wk = params["wk"].astype(jnp.bfloat16)
    wv = params["wv"].astype(jnp.bfloat16)
    wo = params["wo"].astype(jnp.bfloat16)

    kernel = functools.partial(_self_attn_layer_kernel, nhead=nhead,
                               scale=1.0 / math.sqrt(E // nhead), eps=eps)

    tok_spec = pl.BlockSpec((1, L, E), lambda b: (b, 0, 0))
    w_spec = pl.BlockSpec((E, E), lambda b: (0, 0))       # resident across grid
    vec_spec = pl.BlockSpec((1, E), lambda b: (0, 0))

    out = pl.pallas_call(
        kernel,
        out_shape=jax.ShapeDtypeStruct((B, L, E), tgt.dtype),
        grid=(B,),
        in_specs=[tok_spec, tok_spec,
                  w_spec, w_spec, w_spec, w_spec,
                  vec_spec, vec_spec, vec_spec, vec_spec,
                  vec_spec, vec_spec],
        out_specs=tok_spec,
        compiler_params=pltpu.CompilerParams(
            dimension_semantics=("parallel",)),
    )(x, pos, wq, wk, wv, wo,
      params["bq"], params["bk"], params["bv"], params["bo"],
      params["gamma"], params["beta"])

    return jnp.transpose(out, (1, 0, 2))                   # back to (L, B, E)


def init_self_attention_params(key, d_model):
    """Xavier-uniform projections (like the module's _reset_parameters); biases and
    LayerNorm affine get small random perturbations so all kernel paths are exercised."""
    E = d_model

    def xavier(k, shape):
        bound = math.sqrt(6.0 / (shape[0] + shape[1]))
        return jax.random.uniform(k, shape, jnp.float32, -bound, bound)

    ks = jax.random.split(key, 10)
    return {
        "wq": xavier(ks[0], (E, E)),
        "wk": xavier(ks[1], (E, E)),
        "wv": xavier(ks[2], (E, E)),
        "wo": xavier(ks[3], (E, E)),
        "bq": 0.02 * jax.random.normal(ks[4], (1, E), jnp.float32),
        "bk": 0.02 * jax.random.normal(ks[5], (1, E), jnp.float32),
        "bv": 0.02 * jax.random.normal(ks[6], (1, E), jnp.float32),
        "bo": 0.02 * jax.random.normal(ks[7], (1, E), jnp.float32),
        "gamma": 1.0 + 0.02 * jax.random.normal(ks[8], (1, E), jnp.float32),
        "beta": 0.02 * jax.random.normal(ks[9], (1, E), jnp.float32),
    }


def self_attention_layer_ref(tgt, query_pos, params, *, nhead, eps=1e-5):
    """Pure-JAX f32 reference of SelfAttentionLayer.forward_post."""
    L, B, E = tgt.shape
    D = E // nhead
    qk = tgt + query_pos
    q = qk @ params["wq"] + params["bq"]
    k = qk @ params["wk"] + params["bk"]
    v = tgt @ params["wv"] + params["bv"]
    qh = q.reshape(L, B, nhead, D)
    kh = k.reshape(L, B, nhead, D)
    vh = v.reshape(L, B, nhead, D)
    s = jnp.einsum("lbhd,mbhd->bhlm", qh, kh) / math.sqrt(D)
    p = jax.nn.softmax(s, axis=-1)
    attn = jnp.einsum("bhlm,mbhd->lbhd", p, vh).reshape(L, B, E)
    o = attn @ params["wo"] + params["bo"]
    y = tgt + o                                   # dropout p=0.0 -> identity
    mu = jnp.mean(y, -1, keepdims=True)
    var = jnp.mean((y - mu) ** 2, -1, keepdims=True)
    yn = (y - mu) / jnp.sqrt(var + eps)
    return yn * params["gamma"] + params["beta"]


if __name__ == "__main__":
    key = jax.random.PRNGKey(0)
    k_x, k_pos, k_p = jax.random.split(key, 3)

    # Small, lane-aligned config: seq=8, batch=2, d_model=128, nhead=4 (head_dim=32).
    L, B, E, nhead = 8, 2, 128, 4

    tgt = jax.random.normal(k_x, (L, B, E), jnp.float32)
    query_pos = jax.random.normal(k_pos, (L, B, E), jnp.float32)
    params = init_self_attention_params(k_p, E)

    out = self_attention_layer_forward(tgt, query_pos, params, nhead=nhead)
    out = jax.block_until_ready(out)

    ref = self_attention_layer_ref(tgt, query_pos, params, nhead=nhead)
    assert out.shape == (L, B, E), out.shape
    # Kernel uses bf16 matmul operands (f32 accumulation) -> compare to f32
    # reference with a tolerance that comfortably covers bf16 rounding.
    assert jnp.allclose(out, ref, atol=5e-2, rtol=5e-2), \
        float(jnp.max(jnp.abs(out - ref)))

    print("KERNEL_OK")
</pallas_src>

<mosaic_0001>
module attributes {stable_mosaic.version = 11 : i64} {
  func.func @_self_attn_layer_kernel(%arg0: i32, %arg1: memref<1x8x128xf32, #tpu.memory_space<vmem>>, %arg2: memref<1x8x128xf32, #tpu.memory_space<vmem>>, %arg3: memref<128x128xbf16, #tpu.memory_space<vmem>>, %arg4: memref<128x128xbf16, #tpu.memory_space<vmem>>, %arg5: memref<128x128xbf16, #tpu.memory_space<vmem>>, %arg6: memref<128x128xbf16, #tpu.memory_space<vmem>>, %arg7: memref<1x128xf32, #tpu.memory_space<vmem>>, %arg8: memref<1x128xf32, #tpu.memory_space<vmem>>, %arg9: memref<1x128xf32, #tpu.memory_space<vmem>>, %arg10: memref<1x128xf32, #tpu.memory_space<vmem>>, %arg11: memref<1x128xf32, #tpu.memory_space<vmem>>, %arg12: memref<1x128xf32, #tpu.memory_space<vmem>>, %arg13: memref<1x8x128xf32, #tpu.memory_space<vmem>>) attributes {dimension_semantics = [#tpu.dimension_semantics<parallel>], iteration_bounds = array<i64: 2>, scalar_prefetch = 0 : i64, scratch_operands = 0 : i64, tpu.core_type = #tpu.core_type<tc>, window_params = [{transform_indices = @transform_0, window_bounds = array<i64: 1, 8, 128>}, {transform_indices = @transform_1, window_bounds = array<i64: 1, 8, 128>}, {pipeline_mode = #tpu.pipeline_mode<synchronous>, transform_indices = @transform_2, window_bounds = array<i64: 128, 128>}, {pipeline_mode = #tpu.pipeline_mode<synchronous>, transform_indices = @transform_3, window_bounds = array<i64: 128, 128>}, {pipeline_mode = #tpu.pipeline_mode<synchronous>, transform_indices = @transform_4, window_bounds = array<i64: 128, 128>}, {pipeline_mode = #tpu.pipeline_mode<synchronous>, transform_indices = @transform_5, window_bounds = array<i64: 128, 128>}, {pipeline_mode = #tpu.pipeline_mode<synchronous>, transform_indices = @transform_6, window_bounds = array<i64: 1, 128>}, {pipeline_mode = #tpu.pipeline_mode<synchronous>, transform_indices = @transform_7, window_bounds = array<i64: 1, 128>}, {pipeline_mode = #tpu.pipeline_mode<synchronous>, transform_indices = @transform_8, window_bounds = array<i64: 1, 128>}, {pipeline_mode = #tpu.pipeline_mode<synchronous>, transform_indices = @transform_9, window_bounds = array<i64: 1, 128>}, {pipeline_mode = #tpu.pipeline_mode<synchronous>, transform_indices = @transform_10, window_bounds = array<i64: 1, 128>}, {pipeline_mode = #tpu.pipeline_mode<synchronous>, transform_indices = @transform_11, window_bounds = array<i64: 1, 128>}, {transform_indices = @transform_12, window_bounds = array<i64: 1, 8, 128>}]} {
    %c0 = arith.constant 0 : index
    %c0_0 = arith.constant 0 : index
    %c0_1 = arith.constant 0 : index
    %0 = vector.load %arg1[%c0, %c0_0, %c0_1] : memref<1x8x128xf32, #tpu.memory_space<vmem>>, vector<1x8x128xf32>
    %1 = vector.shape_cast %0 : vector<1x8x128xf32> to vector<8x128xf32>
    %c0_2 = arith.constant 0 : index
    %c0_3 = arith.constant 0 : index
    %c0_4 = arith.constant 0 : index
    %2 = vector.load %arg2[%c0_2, %c0_3, %c0_4] : memref<1x8x128xf32, #tpu.memory_space<vmem>>, vector<1x8x128xf32>
    %3 = vector.shape_cast %2 : vector<1x8x128xf32> to vector<8x128xf32>
    %4 = arith.addf %1, %3 : vector<8x128xf32>
    %5 = arith.truncf %4 : vector<8x128xf32> to vector<8x128xbf16>
    %6 = arith.truncf %1 : vector<8x128xf32> to vector<8x128xbf16>
    %c0_5 = arith.constant 0 : index
    %c0_6 = arith.constant 0 : index
    %7 = vector.load %arg3[%c0_5, %c0_6] : memref<128x128xbf16, #tpu.memory_space<vmem>>, vector<128x128xbf16>
    %cst = arith.constant dense<0.000000e+00> : vector<8x128xf32>
    %8 = tpu.matmul %5, %7, %cst {dimension_numbers = #tpu.dot_dimension_numbers<[1], [0], [0], [1], [0, 0, 1, 1], [], []>} : vector<8x128xbf16>, vector<128x128xbf16>, vector<8x128xf32> -> vector<8x128xf32>
    %c0_7 = arith.constant 0 : index
    %c0_8 = arith.constant 0 : index
    %9 = vector.load %arg7[%c0_7, %c0_8] : memref<1x128xf32, #tpu.memory_space<vmem>>, vector<1x128xf32>
    %10 = vector.broadcast %9 : vector<1x128xf32> to vector<8x128xf32>
    %11 = arith.addf %8, %10 : vector<8x128xf32>
    %c0_9 = arith.constant 0 : index
    %c0_10 = arith.constant 0 : index
    %12 = vector.load %arg4[%c0_9, %c0_10] : memref<128x128xbf16, #tpu.memory_space<vmem>>, vector<128x128xbf16>
    %cst_11 = arith.constant dense<0.000000e+00> : vector<8x128xf32>
    %13 = tpu.matmul %5, %12, %cst_11 {dimension_numbers = #tpu.dot_dimension_numbers<[1], [0], [0], [1], [0, 0, 1, 1], [], []>} : vector<8x128xbf16>, vector<128x128xbf16>, vector<8x128xf32> -> vector<8x128xf32>
    %c0_12 = arith.constant 0 : index
    %c0_13 = arith.constant 0 : index
    %14 = vector.load %arg8[%c0_12, %c0_13] : memref<1x128xf32, #tpu.memory_space<vmem>>, vector<1x128xf32>
    %15 = vector.broadcast %14 : vector<1x128xf32> to vector<8x128xf32>
    %16 = arith.addf %13, %15 : vector<8x128xf32>
    %c0_14 = arith.constant 0 : index
    %c0_15 = arith.constant 0 : index
    %17 = vector.load %arg5[%c0_14, %c0_15] : memref<128x128xbf16, #tpu.memory_space<vmem>>, vector<128x128xbf16>
    %cst_16 = arith.constant dense<0.000000e+00> : vector<8x128xf32>
    %18 = tpu.matmul %6, %17, %cst_16 {dimension_numbers = #tpu.dot_dimension_numbers<[1], [0], [0], [1], [0, 0, 1, 1], [], []>} : vector<8x128xbf16>, vector<128x128xbf16>, vector<8x128xf32> -> vector<8x128xf32>
    %c0_17 = arith.constant 0 : index
    %c0_18 = arith.constant 0 : index
    %19 = vector.load %arg9[%c0_17, %c0_18] : memref<1x128xf32, #tpu.memory_space<vmem>>, vector<1x128xf32>
    %20 = vector.broadcast %19 : vector<1x128xf32> to vector<8x128xf32>
    %21 = arith.addf %18, %20 : vector<8x128xf32>
    %c0_19 = arith.constant 0 : index
    %c0_20 = arith.constant 0 : index
    %22 = vector.load %arg6[%c0_19, %c0_20] : memref<128x128xbf16, #tpu.memory_space<vmem>>, vector<128x128xbf16>
    %cst_21 = arith.constant 0.000000e+00 : f32
    %23 = vector.broadcast %cst_21 : f32 to vector<8x128xf32>
    %24 = vector.extract_strided_slice %11 {offsets = [0, 0], sizes = [8, 32], strides = [1, 1]} : vector<8x128xf32> to vector<8x32xf32>
    %25 = arith.truncf %24 : vector<8x32xf32> to vector<8x32xbf16>
    %26 = vector.extract_strided_slice %16 {offsets = [0, 0], sizes = [8, 32], strides = [1, 1]} : vector<8x128xf32> to vector<8x32xf32>
    %27 = arith.truncf %26 : vector<8x32xf32> to vector<8x32xbf16>
    %28 = vector.extract_strided_slice %21 {offsets = [0, 0], sizes = [8, 32], strides = [1, 1]} : vector<8x128xf32> to vector<8x32xf32>
    %29 = arith.truncf %28 : vector<8x32xf32> to vector<8x32xbf16>
    %cst_22 = arith.constant dense<0.000000e+00> : vector<8x8xf32>
    %30 = tpu.matmul %25, %27, %cst_22 {dimension_numbers = #tpu.dot_dimension_numbers<[1], [1], [0], [0], [0, 0, 1, 0], [], []>} : vector<8x32xbf16>, vector<8x32xbf16>, vector<8x8xf32> -> vector<8x8xf32>
    %cst_23 = arith.constant 0.176776692 : f32
    %31 = vector.broadcast %cst_23 : f32 to vector<8x8xf32>
    %32 = arith.mulf %30, %31 : vector<8x8xf32>
    %cst_24 = arith.constant dense<0xFF800000> : vector<8xf32>
    %33 = vector.multi_reduction <maximumf>, %32, %cst_24 [1] : vector<8x8xf32> to vector<8xf32>
    %34 = vector.shape_cast %33 : vector<8xf32> to vector<8x1xf32>
    %35 = vector.broadcast %34 : vector<8x1xf32> to vector<8x8xf32>
    %36 = arith.subf %32, %35 : vector<8x8xf32>
    %37 = math.exp %36 : vector<8x8xf32>
    %cst_25 = arith.constant dense<0.000000e+00> : vector<8xf32>
    %38 = vector.multi_reduction <add>, %37, %cst_25 [1] : vector<8x8xf32> to vector<8xf32>
    %39 = vector.shape_cast %38 : vector<8xf32> to vector<8x1xf32>
    %40 = vector.broadcast %39 : vector<8x1xf32> to vector<8x8xf32>
    %41 = arith.divf %37, %40 : vector<8x8xf32>
    %42 = arith.truncf %41 : vector<8x8xf32> to vector<8x8xbf16>
    %cst_26 = arith.constant dense<0.000000e+00> : vector<8x32xf32>
    %43 = tpu.matmul %42, %29, %cst_26 {dimension_numbers = #tpu.dot_dimension_numbers<[1], [0], [0], [1], [0, 0, 1, 1], [], []>} : vector<8x8xbf16>, vector<8x32xbf16>, vector<8x32xf32> -> vector<8x32xf32>
    %44 = arith.truncf %43 : vector<8x32xf32> to vector<8x32xbf16>
    %45 = vector.extract_strided_slice %22 {offsets = [0, 0], sizes = [32, 128], strides = [1, 1]} : vector<128x128xbf16> to vector<32x128xbf16>
    %cst_27 = arith.constant dense<0.000000e+00> : vector<8x128xf32>
    %46 = tpu.matmul %44, %45, %cst_27 {dimension_numbers = #tpu.dot_dimension_numbers<[1], [0], [0], [1], [0, 0, 1, 1], [], []>} : vector<8x32xbf16>, vector<32x128xbf16>, vector<8x128xf32> -> vector<8x128xf32>
    %47 = arith.addf %23, %46 : vector<8x128xf32>
    %48 = vector.extract_strided_slice %11 {offsets = [0, 32], sizes = [8, 32], strides = [1, 1]} : vector<8x128xf32> to vector<8x32xf32>
    %49 = arith.truncf %48 : vector<8x32xf32> to vector<8x32xbf16>
    %50 = vector.extract_strided_slice %16 {offsets = [0, 32], sizes = [8, 32], strides = [1, 1]} : vector<8x128xf32> to vector<8x32xf32>
    %51 = arith.truncf %50 : vector<8x32xf32> to vector<8x32xbf16>
    %52 = vector.extract_strided_slice %21 {offsets = [0, 32], sizes = [8, 32], strides = [1, 1]} : vector<8x128xf32> to vector<8x32xf32>
    %53 = arith.truncf %52 : vector<8x32xf32> to vector<8x32xbf16>
    %cst_28 = arith.constant dense<0.000000e+00> : vector<8x8xf32>
    %54 = tpu.matmul %49, %51, %cst_28 {dimension_numbers = #tpu.dot_dimension_numbers<[1], [1], [0], [0], [0, 0, 1, 0], [], []>} : vector<8x32xbf16>, vector<8x32xbf16>, vector<8x8xf32> -> vector<8x8xf32>
    %cst_29 = arith.constant 0.176776692 : f32
    %55 = vector.broadcast %cst_29 : f32 to vector<8x8xf32>
    %56 = arith.mulf %54, %55 : vector<8x8xf32>
    %cst_30 = arith.constant dense<0xFF800000> : vector<8xf32>
    %57 = vector.multi_reduction <maximumf>, %56, %cst_30 [1] : vector<8x8xf32> to vector<8xf32>
    %58 = vector.shape_cast %57 : vector<8xf32> to vector<8x1xf32>
    %59 = vector.broadcast %58 : vector<8x1xf32> to vector<8x8xf32>
    %60 = arith.subf %56, %59 : vector<8x8xf32>
    %61 = math.exp %60 : vector<8x8xf32>
    %cst_31 = arith.constant dense<0.000000e+00> : vector<8xf32>
    %62 = vector.multi_reduction <add>, %61, %cst_31 [1] : vector<8x8xf32> to vector<8xf32>
    %63 = vector.shape_cast %62 : vector<8xf32> to vector<8x1xf32>
    %64 = vector.broadcast %63 : vector<8x1xf32> to vector<8x8xf32>
    %65 = arith.divf %61, %64 : vector<8x8xf32>
    %66 = arith.truncf %65 : vector<8x8xf32> to vector<8x8xbf16>
    %cst_32 = arith.constant dense<0.000000e+00> : vector<8x32xf32>
    %67 = tpu.matmul %66, %53, %cst_32 {dimension_numbers = #tpu.dot_dimension_numbers<[1], [0], [0], [1], [0, 0, 1, 1], [], []>} : vector<8x8xbf16>, vector<8x32xbf16>, vector<8x32xf32> -> vector<8x32xf32>
    %68 = arith.truncf %67 : vector<8x32xf32> to vector<8x32xbf16>
    %69 = vector.extract_strided_slice %22 {offsets = [32, 0], sizes = [32, 128], strides = [1, 1]} : vector<128x128xbf16> to vector<32x128xbf16>
    %cst_33 = arith.constant dense<0.000000e+00> : vector<8x128xf32>
    %70 = tpu.matmul %68, %69, %cst_33 {dimension_numbers = #tpu.dot_dimension_numbers<[1], [0], [0], [1], [0, 0, 1, 1], [], []>} : vector<8x32xbf16>, vector<32x128xbf16>, vector<8x128xf32> -> vector<8x128xf32>
    %71 = arith.addf %47, %70 : vector<8x128xf32>
    %72 = vector.extract_strided_slice %11 {offsets = [0, 64], sizes = [8, 32], strides = [1, 1]} : vector<8x128xf32> to vector<8x32xf32>
    %73 = arith.truncf %72 : vector<8x32xf32> to vector<8x32xbf16>
    %74 = vector.extract_strided_slice %16 {offsets = [0, 64], sizes = [8, 32], strides = [1, 1]} : vector<8x128xf32> to vector<8x32xf32>
    %75 = arith.truncf %74 : vector<8x32xf32> to vector<8x32xbf16>
    %76 = vector.extract_strided_slice %21 {offsets = [0, 64], sizes = [8, 32], strides = [1, 1]} : vector<8x128xf32> to vector<8x32xf32>
    %77 = arith.truncf %76 : vector<8x32xf32> to vector<8x32xbf16>
    %cst_34 = arith.constant dense<0.000000e+00> : vector<8x8xf32>
    %78 = tpu.matmul %73, %75, %cst_34 {dimension_numbers = #tpu.dot_dimension_numbers<[1], [1], [0], [0], [0, 0, 1, 0], [], []>} : vector<8x32xbf16>, vector<8x32xbf16>, vector<8x8xf32> -> vector<8x8xf32>
    %cst_35 = arith.constant 0.176776692 : f32
    %79 = vector.broadcast %cst_35 : f32 to vector<8x8xf32>
    %80 = arith.mulf %78, %79 : vector<8x8xf32>
    %cst_36 = arith.constant dense<0xFF800000> : vector<8xf32>
    %81 = vector.multi_reduction <maximumf>, %80, %cst_36 [1] : vector<8x8xf32> to vector<8xf32>
    %82 = vector.shape_cast %81 : vector<8xf32> to vector<8x1xf32>
    %83 = vector.broadcast %82 : vector<8x1xf32> to vector<8x8xf32>
    %84 = arith.subf %80, %83 : vector<8x8xf32>
    %85 = math.exp %84 : vector<8x8xf32>
    %cst_37 = arith.constant dense<0.000000e+00> : vector<8xf32>
    %86 = vector.multi_reduction <add>, %85, %cst_37 [1] : vector<8x8xf32> to vector<8xf32>
    %87 = vector.shape_cast %86 : vector<8xf32> to vector<8x1xf32>
    %88 = vector.broadcast %87 : vector<8x1xf32> to vector<8x8xf32>
    %89 = arith.divf %85, %88 : vector<8x8xf32>
    %90 = arith.truncf %89 : vector<8x8xf32> to vector<8x8xbf16>
    %cst_38 = arith.constant dense<0.000000e+00> : vector<8x32xf32>
    %91 = tpu.matmul %90, %77, %cst_38 {dimension_numbers = #tpu.dot_dimension_numbers<[1], [0], [0], [1], [0, 0, 1, 1], [], []>} : vector<8x8xbf16>, vector<8x32xbf16>, vector<8x32xf32> -> vector<8x32xf32>
    %92 = arith.truncf %91 : vector<8x32xf32> to vector<8x32xbf16>
    %93 = vector.extract_strided_slice %22 {offsets = [64, 0], sizes = [32, 128], strides = [1, 1]} : vector<128x128xbf16> to vector<32x128xbf16>
    %cst_39 = arith.constant dense<0.000000e+00> : vector<8x128xf32>
    %94 = tpu.matmul %92, %93, %cst_39 {dimension_numbers = #tpu.dot_dimension_numbers<[1], [0], [0], [1], [0, 0, 1, 1], [], []>} : vector<8x32xbf16>, vector<32x128xbf16>, vector<8x128xf32> -> vector<8x128xf32>
    %95 = arith.addf %71, %94 : vector<8x128xf32>
    %96 = vector.extract_strided_slice %11 {offsets = [0, 96], sizes = [8, 32], strides = [1, 1]} : vector<8x128xf32> to vector<8x32xf32>
    %97 = arith.truncf %96 : vector<8x32xf32> to vector<8x32xbf16>
    %98 = vector.extract_strided_slice %16 {offsets = [0, 96], sizes = [8, 32], strides = [1, 1]} : vector<8x128xf32> to vector<8x32xf32>
    %99 = arith.truncf %98 : vector<8x32xf32> to vector<8x32xbf16>
    %100 = vector.extract_strided_slice %21 {offsets = [0, 96], sizes = [8, 32], strides = [1, 1]} : vector<8x128xf32> to vector<8x32xf32>
    %101 = arith.truncf %100 : vector<8x32xf32> to vector<8x32xbf16>
    %cst_40 = arith.constant dense<0.000000e+00> : vector<8x8xf32>
    %102 = tpu.matmul %97, %99, %cst_40 {dimension_numbers = #tpu.dot_dimension_numbers<[1], [1], [0], [0], [0, 0, 1, 0], [], []>} : vector<8x32xbf16>, vector<8x32xbf16>, vector<8x8xf32> -> vector<8x8xf32>
    %cst_41 = arith.constant 0.176776692 : f32
    %103 = vector.broadcast %cst_41 : f32 to vector<8x8xf32>
    %104 = arith.mulf %102, %103 : vector<8x8xf32>
    %cst_42 = arith.constant dense<0xFF800000> : vector<8xf32>
    %105 = vector.multi_reduction <maximumf>, %104, %cst_42 [1] : vector<8x8xf32> to vector<8xf32>
    %106 = vector.shape_cast %105 : vector<8xf32> to vector<8x1xf32>
    %107 = vector.broadcast %106 : vector<8x1xf32> to vector<8x8xf32>
    %108 = arith.subf %104, %107 : vector<8x8xf32>
    %109 = math.exp %108 : vector<8x8xf32>
    %cst_43 = arith.constant dense<0.000000e+00> : vector<8xf32>
    %110 = vector.multi_reduction <add>, %109, %cst_43 [1] : vector<8x8xf32> to vector<8xf32>
    %111 = vector.shape_cast %110 : vector<8xf32> to vector<8x1xf32>
    %112 = vector.broadcast %111 : vector<8x1xf32> to vector<8x8xf32>
    %113 = arith.divf %109, %112 : vector<8x8xf32>
    %114 = arith.truncf %113 : vector<8x8xf32> to vector<8x8xbf16>
    %cst_44 = arith.constant dense<0.000000e+00> : vector<8x32xf32>
    %115 = tpu.matmul %114, %101, %cst_44 {dimension_numbers = #tpu.dot_dimension_numbers<[1], [0], [0], [1], [0, 0, 1, 1], [], []>} : vector<8x8xbf16>, vector<8x32xbf16>, vector<8x32xf32> -> vector<8x32xf32>
    %116 = arith.truncf %115 : vector<8x32xf32> to vector<8x32xbf16>
    %117 = vector.extract_strided_slice %22 {offsets = [96, 0], sizes = [32, 128], strides = [1, 1]} : vector<128x128xbf16> to vector<32x128xbf16>
    %cst_45 = arith.constant dense<0.000000e+00> : vector<8x128xf32>
    %118 = tpu.matmul %116, %117, %cst_45 {dimension_numbers = #tpu.dot_dimension_numbers<[1], [0], [0], [1], [0, 0, 1, 1], [], []>} : vector<8x32xbf16>, vector<32x128xbf16>, vector<8x128xf32> -> vector<8x128xf32>
    %119 = arith.addf %95, %118 : vector<8x128xf32>
    %c0_46 = arith.constant 0 : index
    %c0_47 = arith.constant 0 : index
    %120 = vector.load %arg10[%c0_46, %c0_47] : memref<1x128xf32, #tpu.memory_space<vmem>>, vector<1x128xf32>
    %121 = vector.broadcast %120 : vector<1x128xf32> to vector<8x128xf32>
    %122 = arith.addf %119, %121 : vector<8x128xf32>
    %123 = arith.addf %1, %122 : vector<8x128xf32>
    %cst_48 = arith.constant dense<0.000000e+00> : vector<8xf32>
    %124 = vector.multi_reduction <add>, %123, %cst_48 [1] : vector<8x128xf32> to vector<8xf32>
    %125 = vector.shape_cast %124 : vector<8xf32> to vector<8x1xf32>
    %cst_49 = arith.constant 1.280000e+02 : f32
    %126 = vector.broadcast %cst_49 : f32 to vector<8x1xf32>
    %127 = arith.divf %125, %126 : vector<8x1xf32>
    %128 = vector.broadcast %127 : vector<8x1xf32> to vector<8x128xf32>
    %129 = arith.subf %123, %128 : vector<8x128xf32>
    %130 = arith.mulf %129, %129 : vector<8x128xf32>
    %cst_50 = arith.constant dense<0.000000e+00> : vector<8xf32>
    %131 = vector.multi_reduction <add>, %130, %cst_50 [1] : vector<8x128xf32> to vector<8xf32>
    %132 = vector.shape_cast %131 : vector<8xf32> to vector<8x1xf32>
    %cst_51 = arith.constant 1.280000e+02 : f32
    %133 = vector.broadcast %cst_51 : f32 to vector<8x1xf32>
    %134 = arith.divf %132, %133 : vector<8x1xf32>
    %135 = vector.broadcast %127 : vector<8x1xf32> to vector<8x128xf32>
    %136 = arith.subf %123, %135 : vector<8x128xf32>
    %cst_52 = arith.constant 9.99999974E-6 : f32
    %137 = vector.broadcast %cst_52 : f32 to vector<8x1xf32>
    %138 = arith.addf %134, %137 : vector<8x1xf32>
    %139 = math.rsqrt %138 : vector<8x1xf32>
    %140 = vector.broadcast %139 : vector<8x1xf32> to vector<8x128xf32>
    %141 = arith.mulf %136, %140 : vector<8x128xf32>
    %c0_53 = arith.constant 0 : index
    %c0_54 = arith.constant 0 : index
    %142 = vector.load %arg11[%c0_53, %c0_54] : memref<1x128xf32, #tpu.memory_space<vmem>>, vector<1x128xf32>
    %143 = vector.broadcast %142 : vector<1x128xf32> to vector<8x128xf32>
    %144 = arith.mulf %141, %143 : vector<8x128xf32>
    %c0_55 = arith.constant 0 : index
    %c0_56 = arith.constant 0 : index
    %145 = vector.load %arg12[%c0_55, %c0_56] : memref<1x128xf32, #tpu.memory_space<vmem>>, vector<1x128xf32>
    %146 = vector.broadcast %145 : vector<1x128xf32> to vector<8x128xf32>
    %147 = arith.addf %144, %146 : vector<8x128xf32>
    %c0_57 = arith.constant 0 : index
    %c0_58 = arith.constant 0 : index
    %c0_59 = arith.constant 0 : index
    %148 = vector.load %arg13[%c0_57, %c0_58, %c0_59] : memref<1x8x128xf32, #tpu.memory_space<vmem>>, vector<1x8x128xf32>
    %149 = vector.shape_cast %148 : vector<1x8x128xf32> to vector<8x128xf32>
    %150 = vector.shape_cast %147 : vector<8x128xf32> to vector<1x8x128xf32>
    tpu.vector_store %arg13[%c0_57, %c0_58, %c0_59], %150 {strides = array<i32>} : memref<1x8x128xf32, #tpu.memory_space<vmem>>, vector<1x8x128xf32>,
    return
  }
  func.func @transform_0(%arg0: i32) -> (i32, i32, i32) {
    %c0_i32 = arith.constant 0 : i32
    %c0_i32_0 = arith.constant 0 : i32
    %c0_i32_1 = arith.constant 0 : i32
    return %arg0, %c0_i32, %c0_i32_0 : i32, i32, i32
  }
  func.func @transform_1(%arg0: i32) -> (i32, i32, i32) {
    %c0_i32 = arith.constant 0 : i32
    %c0_i32_0 = arith.constant 0 : i32
    %c0_i32_1 = arith.constant 0 : i32
    return %arg0, %c0_i32, %c0_i32_0 : i32, i32, i32
  }
  func.func @transform_2(%arg0: i32) -> (i32, i32) {
    %c0_i32 = arith.constant 0 : i32
    %c0_i32_0 = arith.constant 0 : i32
    %c0_i32_1 = arith.constant 0 : i32
    return %c0_i32, %c0_i32_0 : i32, i32
  }
  func.func @transform_3(%arg0: i32) -> (i32, i32) {
    %c0_i32 = arith.constant 0 : i32
    %c0_i32_0 = arith.constant 0 : i32
    %c0_i32_1 = arith.constant 0 : i32
    return %c0_i32, %c0_i32_0 : i32, i32
  }
  func.func @transform_4(%arg0: i32) -> (i32, i32) {
    %c0_i32 = arith.constant 0 : i32
    %c0_i32_0 = arith.constant 0 : i32
    %c0_i32_1 = arith.constant 0 : i32
    return %c0_i32, %c0_i32_0 : i32, i32
  }
  func.func @transform_5(%arg0: i32) -> (i32, i32) {
    %c0_i32 = arith.constant 0 : i32
    %c0_i32_0 = arith.constant 0 : i32
    %c0_i32_1 = arith.constant 0 : i32
    return %c0_i32, %c0_i32_0 : i32, i32
  }
  func.func @transform_6(%arg0: i32) -> (i32, i32) {
    %c0_i32 = arith.constant 0 : i32
    %c0_i32_0 = arith.constant 0 : i32
    %c0_i32_1 = arith.constant 0 : i32
    return %c0_i32, %c0_i32_0 : i32, i32
  }
  func.func @transform_7(%arg0: i32) -> (i32, i32) {
    %c0_i32 = arith.constant 0 : i32
    %c0_i32_0 = arith.constant 0 : i32
    %c0_i32_1 = arith.constant 0 : i32
    return %c0_i32, %c0_i32_0 : i32, i32
  }
  func.func @transform_8(%arg0: i32) -> (i32, i32) {
    %c0_i32 = arith.constant 0 : i32
    %c0_i32_0 = arith.constant 0 : i32
    %c0_i32_1 = arith.constant 0 : i32
    return %c0_i32, %c0_i32_0 : i32, i32
  }
  func.func @transform_9(%arg0: i32) -> (i32, i32) {
    %c0_i32 = arith.constant 0 : i32
    %c0_i32_0 = arith.constant 0 : i32
    %c0_i32_1 = arith.constant 0 : i32
    return %c0_i32, %c0_i32_0 : i32, i32
  }
  func.func @transform_10(%arg0: i32) -> (i32, i32) {
    %c0_i32 = arith.constant 0 : i32
    %c0_i32_0 = arith.constant 0 : i32
    %c0_i32_1 = arith.constant 0 : i32
    return %c0_i32, %c0_i32_0 : i32, i32
  }
  func.func @transform_11(%arg0: i32) -> (i32, i32) {
    %c0_i32 = arith.constant 0 : i32
    %c0_i32_0 = arith.constant 0 : i32
    %c0_i32_1 = arith.constant 0 : i32
    return %c0_i32, %c0_i32_0 : i32, i32
  }
  func.func @transform_12(%arg0: i32) -> (i32, i32, i32) {
    %c0_i32 = arith.constant 0 : i32
    %c0_i32_0 = arith.constant 0 : i32
    %c0_i32_1 = arith.constant 0 : i32
    return %arg0, %c0_i32, %c0_i32_0 : i32, i32, i32
  }
}

</mosaic_0001>

<bundles_post_ra>
// kernel: self_attention_layer_forward.1
= control target key start
LH: loop header
LB: loop body
LE: loop exit
PB: predicated region body
PF: predicated region fallthrough
CT: control target
= control target key end

     0   :  { %s1953_s21 = smov 0   ;;  %s2226_s0 = inlined_call_operand.vmem [shape: f32[2,8,128], index: 0, kind: input, shape index: {}]   ;;  %s2227_s1 = inlined_call_operand.vmem [shape: f32[2,8,128], index: 1, kind: input, shape index: {}]   ;;  %s2228_s2 = inlined_call_operand.vmem [shape: bf16[128,128], index: 2, kind: input, shape index: {}]   ;;  %s2229_s3 = inlined_call_operand.vmem [shape: bf16[128,128], index: 3, kind: input, shape index: {}]   ;;  %s2230_s4 = inlined_call_operand.vmem [shape: bf16[128,128], index: 4, kind: input, shape index: {}]   ;;  %s2231_s5 = inlined_call_operand.vmem [shape: bf16[128,128], index: 5, kind: input, shape index: {}]   ;;  %s2232_s6 = inlined_call_operand.vmem [shape: f32[1,128], index: 6, kind: input, shape index: {}]   ;;  %s2233_s7 = inlined_call_operand.vmem [shape: f32[1,128], index: 7, kind: input, shape index: {}]   ;;  %s2234_s8 = inlined_call_operand.vmem [shape: f32[1,128], index: 8, kind: input, shape index: {}]   ;;  %s2235_s9 = inlined_call_operand.vmem [shape: f32[1,128], index: 9, kind: input, shape index: {}]   ;;  %s2236_s10 = inlined_call_operand.vmem [shape: f32[1,128], index: 10, kind: input, shape index: {}]   ;;  %s2237_s11 = inlined_call_operand.vmem [shape: f32[1,128], index: 11, kind: input, shape index: {}]   ;;  %s2238_s12 = inlined_call_operand.vmem [shape: f32[2,8,128], index: 12, kind: output, shape index: {}]  }
   0x1 LB: > { %s1557_s22 = sadd.s32 4294967295, %s1881_s21   ;;  %p1561_p0 = scmp.ge.s32.totalorder %s1881_s21, 1  ;;  %s1881_s21 = sphi %s1953_s21, %s22_s21  }
   0x2   : > { %p370_p1 = scmp.lt.s32.totalorder %s1881_s21, 3 }
   0x4   : > { %p371_p2 = pnand %p1561_p0, %p370_p1 }
   0x5   : > { %p414_p3 = scmp.lt.s32.totalorder (!%p371_p2), %s1557_s22, 1  ;;  %s1886_s19 = smov (!%p371_p2), 64  }
   0x6   : > { %374 = sbr.rel (%p371_p2) target bundleno = 3205 (0xc85), region = 68  ;;  %s1887_s30 = smov (!%p371_p2), 32  }
   0xb   : > { %v1825_v0 = vld [vmem:[%s2229_s3 + $0x38] sm:$0xff]   ;;  %v1883_v1 = vmov 0.0   ;;  %v1827_v3 = vld [vmem:[%s2229_s3 + $0x30] sm:$0xff]   ;;  %vm1884_vm0 = vmmov 0   ;;  %v1829_v5 = vld [vmem:[%s2229_s3 + $0x28] sm:$0xff]   ;;  %s2240_s22 = smov (!%p414_p3, %s1557_s22), 1 }
   0xc   : > { %1692 = vmatprep.subr.bf16.mxu1 %v1883_v1  ;;  %1672 = vmatprep.subr.bf16.mxu0 %v1883_v1  ;;  %v1826_v2 = vld [vmem:[%s2228_s2 + $0x38] sm:$0xff]   ;;  %v1828_v4 = vld [vmem:[%s2228_s2 + $0x30] sm:$0xff]   ;;  %v1830_v6 = vld [vmem:[%s2228_s2 + $0x28] sm:$0xff]   ;;  %s2000_s25 = sshll.u32 %s2240_s22, 3  ;;  %vm784_vm1 = vcmask 261120   ;;  %vm832_vm2 = vcmask 64512  }
   0xd   : > { %1693 = vmatpush3.bf16.msra.mxu1 %v1825_v0  ;;  %1708 = vmatprep.mubr.msk.bf16.mxu1 %vm1884_vm0, %v1883_v1  ;;  %v1831_v7 = vld [vmem:[%s2229_s3 + $0x20] sm:$0xff]   ;;  %v1833_v9 = vld [vmem:[%s2229_s3 + $0x18] sm:$0xff]   ;;  %v1835_v11 = vld [vmem:[%s2229_s3 + $0x10] sm:$0xff]   ;;  %s417_s15 = scalar_lea.vmem %s2226_s0, %s2000_s25  ;;  %s421_s18 = scalar_lea.vmem %s2227_s1, %s2000_s25  ;;  %vm848_vm3 = vcmask 1043456  }
   0xe   : > { %1673 = vmatpush3.bf16.msra.mxu0 %v1826_v2  ;;  %1694 = vmatprep.subr.bf16.mxu1 %v1883_v1  ;;  %v1832_v8 = vld [vmem:[%s2228_s2 + $0x20] sm:$0xff]   ;;  %v1834_v10 = vld [vmem:[%s2228_s2 + $0x18] sm:$0xff]   ;;  %v1836_v12 = vld [vmem:[%s2228_s2 + $0x10] sm:$0xff]   ;;  %s425_s13 = scalar_lea.vmem %s2238_s12, %s2000_s25 }
   0xf   : > { %1674 = vmatprep.subr.bf16.mxu0 %v1883_v1  ;;  %1688 = vmatprep.mubr.msk.bf16.mxu0 %vm1884_vm0, %v1883_v1  ;;  %v1837_v13 = vld [vmem:[%s2229_s3 + $0x8] sm:$0xff]   ;;  %v2026_v14 = vld [vmem:[%s417_s15] sm:$0xff]  ;;  %s1885_s15 = smov 96   ;;  %v1841_v36 = vld [vmem:[%s2230_s4 + $0x38] sm:$0xff]  }
  0x10   : > { %v428_v15 = vld [vmem:[%s421_s18] sm:$0xff]  ;;  %v1838_v16 = vld [vmem:[%s2228_s2 + $0x8] sm:$0xff]   ;;  %v1842_v37 = vld [vmem:[%s2230_s4 + $0x30] sm:$0xff]   ;;  %v431_v44 = vpack.c.bf16 %v2026_v14, %v2026_v14 }
  0x11   : > { %1695 = vmatpush3.bf16.msra.mxu1 %v1827_v3  ;;  %v1839_v17 = vld [vmem:[%s2229_s3] sm:$0xff]   ;;  %v429_v18 = vadd.f32 %v428_v15, %v2026_v14  ;;  %v1843_v38 = vld [vmem:[%s2230_s4 + $0x28] sm:$0xff]   ;;  %v1845_v40 = vld [vmem:[%s2230_s4 + $0x18] sm:$0xff]  }
  0x12   : > { %1675 = vmatpush3.bf16.msra.mxu0 %v1828_v4  ;;  %1696 = vmatprep.subr.bf16.mxu1 %v1883_v1  ;;  %v1840_v19 = vld [vmem:[%s2228_s2] sm:$0xff]   ;;  %v1846_v41 = vld [vmem:[%s2230_s4 + $0x10] sm:$0xff]   ;;  %v1847_v42 = vld [vmem:[%s2230_s4 + $0x8] sm:$0xff]  }
  0x13   : > { %1676 = vmatprep.subr.bf16.mxu0 %v1883_v1  ;;  %v430_v20 = vpack.c.bf16 %v429_v18, %v429_v18  ;;  %v1574_v21 = vld [vmem:[%s2233_s7] ss:$0 sm:$0xff] }
  0x14   : > { %v1565_v22 = vld [vmem:[%s2232_s6] ss:$0 sm:$0xff] }
  0x15   : > { %1697 = vmatpush3.bf16.msra.mxu1 %v1829_v5  ;;  %v1844_v39 = vld [vmem:[%s2230_s4 + $0x20] sm:$0xff]  }
  0x16   : > { %1677 = vmatpush3.bf16.msra.mxu0 %v1830_v6  ;;  %1698 = vmatprep.subr.bf16.mxu1 %v1883_v1  ;;  %v1848_v43 = vld [vmem:[%s2230_s4] sm:$0xff]  }
  0x17   : > { %1678 = vmatprep.subr.bf16.mxu0 %v1883_v1  ;;  %v1583_v56 = vld [vmem:[%s2234_s8] ss:$0 sm:$0xff] }
  0x19   : > { %1699 = vmatpush3.bf16.msra.mxu1 %v1831_v7 }
  0x1a   : > { %1679 = vmatpush3.bf16.msra.mxu0 %v1832_v8  ;;  %1700 = vmatprep.subr.bf16.mxu1 %v1883_v1 }
  0x1b   : > { %1680 = vmatprep.subr.bf16.mxu0 %v1883_v1 }
  0x1d   : > { %1701 = vmatpush3.bf16.msra.mxu1 %v1833_v9 }
  0x1e   : > { %1681 = vmatpush3.bf16.msra.mxu0 %v1834_v10  ;;  %1702 = vmatprep.subr.bf16.mxu1 %v1883_v1 }
  0x1f   : > { %1682 = vmatprep.subr.bf16.mxu0 %v1883_v1 }
  0x21   : > { %1703 = vmatpush3.bf16.msra.mxu1 %v1835_v11 }
  0x22   : > { %1683 = vmatpush3.bf16.msra.mxu0 %v1836_v12  ;;  %1704 = vmatprep.subr.bf16.mxu1 %v1883_v1 }
  0x23   : > { %1684 = vmatprep.subr.bf16.mxu0 %v1883_v1 }
  0x25   : > { %1705 = vmatpush3.bf16.msra.mxu1 %v1837_v13 }
  0x26   : > { %1685 = vmatpush3.bf16.msra.mxu0 %v1838_v16  ;;  %1706 = vmatprep.subr.bf16.mxu1 %v1883_v1 }
  0x27   : > { %1686 = vmatprep.subr.bf16.mxu0 %v1883_v1 }
  0x29   : > { %1707 = vmatpush3.bf16.msra.mxu1 %v1839_v17 }
  0x2a   : > { %1687 = vmatpush3.bf16.msra.mxu0 %v1840_v19  ;;  %1732 = vmatprep.subr.bf16.mxu1 %v1883_v1 }
  0x2b   : > { %1712 = vmatprep.subr.bf16.mxu0 %v1883_v1 }
  0x2c   : > { %1709 = vmatmul.mubr.bf16.vlgmr.msra.gmra.mxu1 %v430_v20 }
  0x2d   : > { %1689 = vmatmul.mubr.bf16.vlgmr.msra.gmra.mxu0 %v430_v20  ;;  %1734 = vmatprep.mubr.msk.bf16.mxu1 %vm1884_vm0, %v1883_v1 }
  0x2e   : > { %1728 = vmatprep.mubr.msk.bf16.mxu0 %vm1884_vm0, %v1883_v1  ;;  %1713 = vmatpush3.bf16.msra.mxu0 %v1841_v36 }
  0x2f   : > { %1714 = vmatprep.subr.bf16.mxu0 %v1883_v1 }
  0x32   : > { %1715 = vmatpush3.bf16.msra.mxu0 %v1842_v37 }
  0x33   : > { %1716 = vmatprep.subr.bf16.mxu0 %v1883_v1 }
  0x36   : > { %1717 = vmatpush3.bf16.msra.mxu0 %v1843_v38 }
  0x37   : > { %1718 = vmatprep.subr.bf16.mxu0 %v1883_v1 }
  0x3a   : > { %1719 = vmatpush3.bf16.msra.mxu0 %v1844_v39 }
  0x3b   : > { %1720 = vmatprep.subr.bf16.mxu0 %v1883_v1 }
  0x3e   : > { %1721 = vmatpush3.bf16.msra.mxu0 %v1845_v40 }
  0x3f   : > { %1722 = vmatprep.subr.bf16.mxu0 %v1883_v1 }
  0x42   : > { %1723 = vmatpush3.bf16.msra.mxu0 %v1846_v41 }
  0x43   : > { %1724 = vmatprep.subr.bf16.mxu0 %v1883_v1 }
  0x46   : > { %1725 = vmatpush3.bf16.msra.mxu0 %v1847_v42 }
  0x47   : > { %1726 = vmatprep.subr.bf16.mxu0 %v1883_v1 }
  0x4a   : > { %1727 = vmatpush3.bf16.msra.mxu0 %v1848_v43 }
  0x4b   : > { %1756 = vmatprep.subr.bf16.mxu0 %v1883_v1 }
  0x4d   : > { %1729 = vmatmul.mubr.bf16.vlgmr.msra.gmra.mxu0 %v431_v44 }
  0x4e   : > { %1760 = vmatprep.mubr.msk.bf16.mxu0 %vm1884_vm0, %v1883_v1 }
  0xec   : > { %v648_v23 = vpop.f32.mrf.mxu1 }
  0xed   : > { %v649_v24 = vadd.f32 %v1574_v21, %v648_v23  ;;  %v537_v25 = vpop.f32.mrf.mxu0 }
  0xee   : > { %v1710_v26 = vpop.f32.mrf.mxu1  ;;  %v538_v27 = vadd.f32 %v1565_v22, %v537_v25 }
  0xef   : > { %v2054_v28 = vpack.c.bf16 %v649_v24, %v649_v24  ;;  %v1690_v29 = vpop.f32.mrf.mxu0  ;;  %v1851_v26 = vld [vmem:[%s2231_s5 + $0x18] sm:$0xff]  }
  0xf0   : > { %v651_v30 = vpop.f32.mrf.mxu1  ;;  %v2056_v31 = vpack.c.bf16 %v538_v27, %v538_v27  ;;  %1757 = vmatpush3.bf16.msra.mxu0 %v1851_v26  ;;  %v1852_v27 = vld [vmem:[%s2231_s5 + $0x10] sm:$0xff]  }
  0xf1   : > { %897 = vrot.lane.b32.xlu1 %v2054_v28, %s1885_s15  ;;  %v789_v32 = vsel %vm784_vm1, %v2054_v28, 0  ;;  %v540_v33 = vpop.f32.mrf.mxu0  ;;  %1758 = vmatprep.subr.bf16.mxu0 %v1883_v1 }
  0xf2   : > { %v1711_v34 = vpop.f32.mrf.mxu1  ;;  %1733 = vmatpush3.bf16.xpose.msra.mxu1 %v789_v32  ;;  %v1849_v33 = vld [vmem:[%s2231_s5 + $0x8] sm:$0xff]  }
  0xf3   : > { %v1691_v35 = vpop.f32.mrf.mxu0  ;;  %1738 = vmatprep.subr.bf16.mxu1 %v1883_v1 }
  0xf4   : > { %1759 = vmatpush3.bf16.msra.mxu0 %v1852_v27  ;;  %v1850_v35 = vld [vmem:[%s2231_s5] sm:$0xff]  }
  0xf5   : > { %894 = vrot.lane.b32.xlu1 %v2056_v31, %s1885_s15  ;;  %1772 = vmatprep.subr.bf16.mxu0 %v1883_v1 }
  0xf9   : > { %1735 = vmatmul.mubr.msk.bf16.vlgmr.msra.gmra.mxu1 %vm784_vm1, %v2056_v31 }
  0xfa   : > { %1740 = vmatprep.mubr.msk.bf16.mxu1 %vm1884_vm0, %v1883_v1 }
 0x10d   : > { %v759_v57 = vpop.f32.mrf.mxu0 }
 0x10e   : > { %v760_v58 = vadd.f32 %v1583_v56, %v759_v57 }
 0x10f   : > { %v1730_v59 = vpop.f32.mrf.mxu0 }
 0x110   : > { %v2110_v60 = vpack.c.bf16 %v760_v58, %v760_v58 }
 0x111   : > { %v762_v61 = vpop.f32.mrf.mxu0 }
 0x112   : > { %v850_v62 = vsel %vm848_vm3, %v2110_v60, 0 }
 0x113   : > { %v1731_v63 = vpop.f32.mrf.mxu0  ;;  %1739 = vmatpush3.bf16.msra.mxu1 %v850_v62 }
 0x114   : > { %1744 = vmatprep.subr.bf16.mxu1 %v1883_v1 }
 0x163   : > { %v898_v4 = vpop.permute.xlu1 %897 }
 0x164   : > { %v903_v6 = vsel %vm784_vm1, %v898_v4, 0  ;;  %v1853_v4 = vld [vmem:[%s2231_s5 + $0x28] sm:$0xff]  }
 0x167   : > { %v895_v7 = vpop.permute.xlu1 %894 }
 0x1b9   : > { %v825_v45 = vpop.f32.mrf.mxu1 }
 0x1ba   : > { %v831_v46 = vmul.f32 0.17677669, %v825_v45 }
 0x1bb   : > { %v1736_v47 = vpop.f32.mrf.mxu1 }
 0x1bc   : > { %v833_v48 = vsel %vm832_vm2, %v831_v46, -inf }
 0x1bd   : > { %834 = vmax.xlane.f32.xlu0 %v833_v48  ;;  %v828_v49 = vpop.f32.mrf.mxu1 }
 0x1bf   : > { %v1737_v50 = vpop.f32.mrf.mxu1 }
 0x246   : > { %v835_v51 = vpop.xlane.xlu0 %834 }
 0x247   : > { %v836_v52 = vsub.f32 %v831_v46, %v835_v51 }
 0x249   : > { %v837_v53 = vmul.f32 1.442695, %v836_v52 }
 0x24b   : > { %1857 = vpow2.f32 %v837_v53 }
 0x258   : > { %v1858_v54 = vpop.eup %1857 }
 0x259   : > { %v839_v55 = vsel %vm832_vm2, %v1858_v54, 0.0 }
 0x25a   : > { %840 = vadd.xlane.f32.xlu0 %v839_v55 }
 0x2e3   : > { %v841_v0 = vpop.xlane.xlu0 %840 }
 0x2e4   : > { %1859 = vrcp.f32 %v841_v0 }
 0x2f1   : > { %v1860_v2 = vpop.eup %1859 }
 0x2f2   : > { %v843_v3 = vmul.f32 %v1860_v2, %v1858_v54 }
 0x2f4   : > { %v844_v5 = vpack.c.bf16 %v843_v3, %v843_v3 }
 0x2f6   : > { %1741 = vmatmul.mubr.msk.bf16.vlgmr.msra.gmra.mxu1 %vm832_vm2, %v844_v5 }
 0x2f7   : > { %1745 = vmatpush3.bf16.xpose.msra.mxu1 %v903_v6  ;;  %1746 = vmatprep.mubr.msk.bf16.mxu1 %vm1884_vm0, %v1883_v1 }
 0x2f8   : > { %1750 = vmatprep.subr.bf16.mxu1 %v1883_v1 }
 0x2fe   : > { %1747 = vmatmul.mubr.msk.bf16.vlgmr.msra.gmra.mxu1 %vm784_vm1, %v895_v7 }
 0x2ff   : > { %1752 = vmatprep.mubr.msk.bf16.mxu1 %vm1884_vm0, %v1883_v1 }
 0x3b6   : > { %v886_v8 = vpop.f32.mrf.mxu1 }
 0x3b7   : > { %v892_v37 = vpack.c.bf16 %v886_v8, %v886_v8 }
 0x3b8   : > { %v1742_v9 = vpop.f32.mrf.mxu1 }
 0x3ba   : > { %v889_v10 = vpop.f32.mrf.mxu1 }
 0x3bc   : > { %v1743_v11 = vpop.f32.mrf.mxu1 }
 0x3be   : > { %v939_v12 = vpop.f32.mrf.mxu1 }
 0x3bf   : > { %v945_v13 = vmul.f32 0.17677669, %v939_v12 }
 0x3c0   : > { %v1748_v15 = vpop.f32.mrf.mxu1 }
 0x3c1   : > { %v946_v16 = vsel %vm832_vm2, %v945_v13, -inf }
 0x3c2   : > { %947 = vmax.xlane.f32.xlu0 %v946_v16  ;;  %v942_v17 = vpop.f32.mrf.mxu1 }
 0x3c4   : > { %v1749_v18 = vpop.f32.mrf.mxu1 }
 0x3d8   : > { %959 = vrot.lane.b32.xlu0 %v2110_v60, %s1885_s15 }
 0x3dc   : > { %1120 = vrot.lane.b32.xlu0 %v2054_v28, %s1886_s19 }
 0x3e0   : > { %1118 = vrot.lane.b32.xlu0 %v2056_v31, %s1886_s19 }
 0x44b   : > { %v948_v19 = vpop.xlane.xlu0 %947 }
 0x44c   : > { %v949_v20 = vsub.f32 %v945_v13, %v948_v19 }
 0x44e   : > { %v950_v21 = vmul.f32 1.442695, %v949_v20 }
 0x44f   : > { %v960_v22 = vpop.permute.xlu0 %959 }
 0x450   : > { %1861 = vpow2.f32 %v950_v21  ;;  %v965_v23 = vsel %vm848_vm3, %v960_v22, 0 }
 0x451   : > { %1751 = vmatpush3.bf16.msra.mxu1 %v965_v23 }
 0x452   : > { %1764 = vmatprep.subr.bf16.mxu1 %v1883_v1 }
 0x453   : > { %v1121_v39 = vpop.permute.xlu0 %1120 }
 0x454   : > { %v1126_v43 = vsel %vm784_vm1, %v1121_v39, 0 }
 0x457   : > { %v1119_v47 = vpop.permute.xlu0 %1118 }
 0x45d   : > { %v1862_v24 = vpop.eup %1861 }
 0x45e   : > { %v952_v25 = vsel %vm832_vm2, %v1862_v24, 0.0 }
 0x45f   : > { %953 = vadd.xlane.f32.xlu1 %v952_v25 }
 0x470   : > { %1181 = vrot.lane.b32.xlu1 %v2110_v60, %s1886_s19 }
 0x4e8   : > { %v954_v29 = vpop.xlane.xlu1 %953 }
 0x4e9   : > { %1863 = vrcp.f32 %v954_v29 }
 0x4ec   : > { %v1182_v36 = vpop.permute.xlu1 %1181 }
 0x4ed   : > { %v1187_v38 = vsel %vm848_vm3, %v1182_v36, 0 }
 0x4f6   : > { %v1864_v30 = vpop.eup %1863 }
 0x4f7   : > { %v956_v32 = vmul.f32 %v1864_v30, %v1862_v24 }
 0x4f9   : > { %v957_v34 = vpack.c.bf16 %v956_v32, %v956_v32 }
 0x4fb   : > { %1753 = vmatmul.mubr.msk.bf16.vlgmr.msra.gmra.mxu1 %vm832_vm2, %v957_v34 }
 0x4fc   : > { %1765 = vmatpush3.bf16.msra.mxu1 %v1849_v33  ;;  %1768 = vmatprep.mubr.msk.bf16.mxu1 %vm1884_vm0, %v1883_v1 }
 0x4fd   : > { %1766 = vmatprep.subr.bf16.mxu1 %v1883_v1 }
 0x500   : > { %1767 = vmatpush3.bf16.msra.mxu1 %v1850_v35 }
 0x501   : > { %1778 = vmatprep.subr.bf16.mxu1 %v1883_v1 }
 0x503   : > { %1769 = vmatmul.mubr.msk.bf16.vlgmr.msra.gmra.mxu1 %vm784_vm1, %v892_v37 }
 0x504   : > { %1779 = vmatpush3.bf16.msra.mxu1 %v1187_v38  ;;  %1780 = vmatprep.mubr.msk.bf16.mxu1 %vm1884_vm0, %v1883_v1 }
 0x505   : > { %1792 = vmatprep.subr.bf16.mxu1 %v1883_v1 }
 0x5bb   : > { %v1001_v40 = vpop.f32.mrf.mxu1 }
 0x5bc   : > { %v1007_v41 = vpack.c.bf16 %v1001_v40, %v1001_v40 }
 0x5bd   : > { %v1754_v42 = vpop.f32.mrf.mxu1 }
 0x5be   : > { %1761 = vmatmul.mubr.msk.bf16.vlgmr.msra.gmra.mxu0 %vm784_vm1, %v1007_v41  ;;  %v1856_v42 = vld [vmem:[%s2231_s5 + $0x30] sm:$0xff]  }
 0x5bf   : > { %1773 = vmatpush3.bf16.xpose.msra.mxu0 %v1126_v43  ;;  %v1004_v44 = vpop.f32.mrf.mxu1  ;;  %1774 = vmatprep.mubr.msk.bf16.mxu0 %vm1884_vm0, %v1883_v1 }
 0x5c0   : > { %1784 = vmatprep.subr.bf16.mxu0 %v1883_v1 }
 0x5c1   : > { %v1755_v45 = vpop.f32.mrf.mxu1 }
 0x5c3   : > { %v2161_v46 = vpop.f32.mrf.mxu1 }
 0x5c5   : > { %v1770_v48 = vpop.f32.mrf.mxu1 }
 0x5c6   : > { %1775 = vmatmul.mubr.msk.bf16.vlgmr.msra.gmra.mxu0 %vm784_vm1, %v1119_v47  ;;  %v1612_v48 = vld [vmem:[%s2235_s9] ss:$0 sm:$0xff] }
 0x5c7   : > { %v1115_v49 = vpop.f32.mrf.mxu1  ;;  %1788 = vmatprep.mubr.msk.bf16.mxu0 %vm1884_vm0, %v1883_v1  ;;  %1785 = vmatpush3.bf16.msra.mxu0 %v1853_v4 }
 0x5c8   : > { %1786 = vmatprep.subr.bf16.mxu0 %v1883_v1 }
 0x5c9   : > { %v1771_v50 = vpop.f32.mrf.mxu1 }
 0x67e   : > { %v2166_v51 = vpop.f32.mrf.mxu0 }
 0x67f   : > { %v1113_v32 = vadd.f32 %v2161_v46, %v2166_v51 }
 0x680   : > { %v1762_v52 = vpop.f32.mrf.mxu0 }
 0x682   : > { %v1060_v53 = vpop.f32.mrf.mxu0 }
 0x684   : > { %v1763_v54 = vpop.f32.mrf.mxu0 }
 0x686   : > { %v1162_v55 = vpop.f32.mrf.mxu0 }
 0x687   : > { %v1168_v56 = vmul.f32 0.17677669, %v1162_v55 }
 0x688   : > { %v1776_v57 = vpop.f32.mrf.mxu0 }
 0x689   : > { %v1169_v58 = vsel %vm832_vm2, %v1168_v56, -inf }
 0x68a   : > { %1170 = vmax.xlane.f32.xlu0 %v1169_v58  ;;  %v1165_v59 = vpop.f32.mrf.mxu0 }
 0x68c   : > { %v1777_v61 = vpop.f32.mrf.mxu0 }
 0x713   : > { %v1171_v62 = vpop.xlane.xlu0 %1170 }
 0x714   : > { %v1172_v63 = vsub.f32 %v1168_v56, %v1171_v62 }
 0x716   : > { %v1173_v0 = vmul.f32 1.442695, %v1172_v63 }
 0x718   : > { %1865 = vpow2.f32 %v1173_v0  ;;  %v1613_v0 = vld [vmem:[%s2236_s10] ss:$0 sm:$0xff] }
 0x725   : > { %v1866_v2 = vpop.eup %1865 }
 0x726   : > { %v1175_v3 = vsel %vm832_vm2, %v1866_v2, 0.0 }
 0x727   : > { %1176 = vadd.xlane.f32.xlu1 %v1175_v3 }
 0x738   : > { %1288 = vrot.lane.b32.xlu1 %v2054_v28, %s1887_s30 }
 0x73c   : > { %1286 = vrot.lane.b32.xlu1 %v2056_v31, %s1887_s30  ;;  %v1854_v31 = vld [vmem:[%s2231_s5 + $0x20] sm:$0xff]  }
 0x73d   : > { %1787 = vmatpush3.bf16.msra.mxu0 %v1854_v31 }
 0x73e   : > { %1798 = vmatprep.subr.bf16.mxu0 %v1883_v1 }
 0x7b0   : > { %v1177_v5 = vpop.xlane.xlu1 %1176 }
 0x7b1   : > { %1867 = vrcp.f32 %v1177_v5 }
 0x7b4   : > { %v1289_v8 = vpop.permute.xlu1 %1288 }
 0x7b5   : > { %v1294_v10 = vsel %vm784_vm1, %v1289_v8, 0 }
 0x7b8   : > { %v1287_v28 = vpop.permute.xlu1 %1286 }
 0x7be   : > { %v1868_v6 = vpop.eup %1867 }
 0x7bf   : > { %v1179_v7 = vmul.f32 %v1868_v6, %v1866_v2 }
 0x7c1   : > { %v1180_v9 = vpack.c.bf16 %v1179_v7, %v1179_v7 }
 0x7c3   : > { %1781 = vmatmul.mubr.msk.bf16.vlgmr.msra.gmra.mxu1 %vm832_vm2, %v1180_v9 }
 0x7c4   : > { %1793 = vmatpush3.bf16.xpose.msra.mxu1 %v1294_v10  ;;  %1794 = vmatprep.mubr.msk.bf16.mxu1 %vm1884_vm0, %v1883_v1 }
 0x7c5   : > { %1804 = vmatprep.subr.bf16.mxu1 %v1883_v1 }
 0x7cb   : > { %1795 = vmatmul.mubr.msk.bf16.vlgmr.msra.gmra.mxu1 %vm784_vm1, %v1287_v28 }
 0x7cc   : > { %1808 = vmatprep.mubr.msk.bf16.mxu1 %vm1884_vm0, %v1883_v1 }
 0x883   : > { %v1223_v11 = vpop.f32.mrf.mxu1 }
 0x884   : > { %v1229_v12 = vpack.c.bf16 %v1223_v11, %v1223_v11 }
 0x885   : > { %v1782_v13 = vpop.f32.mrf.mxu1 }
 0x886   : > { %1789 = vmatmul.mubr.msk.bf16.vlgmr.msra.gmra.mxu0 %vm784_vm1, %v1229_v12 }
 0x887   : > { %v1226_v15 = vpop.f32.mrf.mxu1  ;;  %1800 = vmatprep.mubr.msk.bf16.mxu0 %vm1884_vm0, %v1883_v1 }
 0x889   : > { %v1783_v16 = vpop.f32.mrf.mxu1 }
 0x88b   : > { %v1330_v17 = vpop.f32.mrf.mxu1 }
 0x88c   : > { %v1336_v18 = vmul.f32 0.17677669, %v1330_v17 }
 0x88d   : > { %v1796_v19 = vpop.f32.mrf.mxu1 }
 0x88e   : > { %v1337_v20 = vsel %vm832_vm2, %v1336_v18, -inf }
 0x88f   : > { %1338 = vmax.xlane.f32.xlu0 %v1337_v20  ;;  %v1333_v21 = vpop.f32.mrf.mxu1 }
 0x891   : > { %v1797_v22 = vpop.f32.mrf.mxu1 }
 0x8a5   : > { %1349 = vrot.lane.b32.xlu0 %v2110_v60, %s1887_s30  ;;  %v1855_v60 = vld [vmem:[%s2231_s5 + $0x38] sm:$0xff]  }
 0x8a6   : > { %1805 = vmatpush3.bf16.msra.mxu1 %v1855_v60 }
 0x8a7   : > { %1806 = vmatprep.subr.bf16.mxu1 %v1883_v1 }
 0x8aa   : > { %1807 = vmatpush3.bf16.msra.mxu1 %v1856_v42 }
 0x918   : > { %v1339_v23 = vpop.xlane.xlu0 %1338 }
 0x919   : > { %v1340_v24 = vsub.f32 %v1336_v18, %v1339_v23 }
 0x91b   : > { %v1341_v25 = vmul.f32 1.442695, %v1340_v24 }
 0x91c   : > { %v1350_v26 = vpop.permute.xlu0 %1349 }
 0x91d   : > { %1869 = vpow2.f32 %v1341_v25  ;;  %v1355_v27 = vsel %vm848_vm3, %v1350_v26, 0 }
 0x91e   : > { %1799 = vmatpush3.bf16.msra.mxu0 %v1355_v27 }
 0x92a   : > { %v1870_v29 = vpop.eup %1869 }
 0x92b   : > { %v1343_v30 = vsel %vm832_vm2, %v1870_v29, 0.0 }
 0x92c   : > { %1344 = vadd.xlane.f32.xlu1 %v1343_v30 }
 0x946   : > { %v1279_v33 = vpop.f32.mrf.mxu0 }
 0x947   : > { %v1285_v34 = vadd.f32 %v1279_v33, %v1113_v32 }
 0x948   : > { %v1790_v35 = vpop.f32.mrf.mxu0 }
 0x94a   : > { %v1282_v36 = vpop.f32.mrf.mxu0 }
 0x94c   : > { %v1791_v37 = vpop.f32.mrf.mxu0 }
 0x9b5   : > { %v1345_v38 = vpop.xlane.xlu1 %1344 }
 0x9b6   : > { %1871 = vrcp.f32 %v1345_v38 }
 0x9c3   : > { %v1872_v39 = vpop.eup %1871 }
 0x9c4   : > { %v1347_v40 = vmul.f32 %v1872_v39, %v1870_v29 }
 0x9c6   : > { %v1348_v41 = vpack.c.bf16 %v1347_v40, %v1347_v40 }
 0x9c8   : > { %1801 = vmatmul.mubr.msk.bf16.vlgmr.msra.gmra.mxu0 %vm832_vm2, %v1348_v41 }
 0xa88   : > { %v1391_v43 = vpop.f32.mrf.mxu0 }
 0xa89   : > { %v1397_v44 = vpack.c.bf16 %v1391_v43, %v1391_v43 }
 0xa8a   : > { %v1802_v45 = vpop.f32.mrf.mxu0 }
 0xa8b   : > { %1809 = vmatmul.mubr.msk.bf16.vlgmr.msra.gmra.mxu1 %vm784_vm1, %v1397_v44 }
 0xa8c   : > { %v1394_v46 = vpop.f32.mrf.mxu0 }
 0xa8e   : > { %v1803_v1 = vpop.f32.mrf.mxu0 }
 0xb4b   : > { %v1447_v47 = vpop.f32.mrf.mxu1 }
 0xb4c   : > { %v1453_v49 = vadd.f32 %v1447_v47, %v1285_v34 }
 0xb4d   : > { %v1810_v50 = vpop.f32.mrf.mxu1 }
 0xb4e   : > { %v1461_v51 = vadd.f32 %v1612_v48, %v1453_v49 }
 0xb4f   : > { %v1450_v52 = vpop.f32.mrf.mxu1 }
 0xb50   : > { %v1462_v53 = vadd.f32 %v1461_v51, %v2026_v14  ;;  %v1614_v14 = vld [vmem:[%s2237_s11] ss:$0 sm:$0xff] }
 0xb51   : > { %v1811_v54 = vpop.f32.mrf.mxu1 }
 0xb52   : > { %1463 = vadd.xlane.f32.xlu0 %v1462_v53 }
 0xbdb   : > { %v1464_v55 = vpop.xlane.xlu0 %1463 }
 0xbdc   : > { %v1466_v56 = vmul.f32 0.0078125, %v1464_v55 }
 0xbde   : > { %v1467_v57 = vsub.f32 %v1462_v53, %v1466_v56 }
 0xbe0   : > { %v1468_v58 = vmul.f32 %v1467_v57, %v1467_v57 }
 0xbe2   : > { %1469 = vadd.xlane.f32.xlu1 %v1468_v58 }
 0xc6b   : > { %v1470_v59 = vpop.xlane.xlu1 %1469 }
 0xc6c   : > { %v1471_v61 = vmul.f32 0.0078125, %v1470_v59 }
 0xc6e   : > { %v1472_v62 = vadd.f32 1e-05, %v1471_v61 }
 0xc70   : > { %1873 = vrsqrt.f32 %v1472_v62 }
 0xc7d   : > { %v1874_v63 = vpop.eup %1873 }
 0xc7e   : > { %v1474_v2 = vmul.f32 %v1874_v63, %v1467_v57 }
 0xc80   : > { %v1482_v3 = vmul.f32 %v1613_v0, %v1474_v2 }
 0xc82   : > { %v1490_v4 = vadd.f32 %v1614_v14, %v1482_v3 }
 0xc84   : > { %1491 = vst [vmem:[%s425_s13] sm:$0xff] %v1490_v4 }
 0xc85 PF: > { %s22_s21 = sadd.s32 1, %s1881_s21  }
 0xc86   : > { %p19_p4 = scmp.ge.s32.totalorder %s22_s21, 4  }
 0xc88   :  { %21 = sbr.rel (!%p19_p4) target bundleno = 1 (0x1), region = 101 }

</bundles_post_ra>
